<compile_context>
chip_gen: v7x
topology: tpu7x:2x2x1
jax: 0.10.0
libtpu: 0.0.40
codegen_flags: <defaults>
</compile_context>

<pallas_src>
import jax
import jax.numpy as jnp
import numpy as np
from jax.experimental import pallas as pl
from jax.experimental.pallas import tpu as pltpu

_LANES = 128
_NEUTRAL_LOGIT = -1.0e4  # sigmoid(-1e4) == 0.0 in f32; representable in f16/bf16.


def _make_kernel(block_rows, rows, steps_per_core, needs_mask):
    """rows / block_rows / steps_per_core / needs_mask are static Python values."""

    def kernel(x_ref, t_ref, acc_ref):
        # x_ref/t_ref: (block_rows, 128) native-dtype tiles.
        # acc_ref:     (1, 3, 128) f32 resident accumulator for this core.
        c_id = pl.program_id(0)   # "parallel" axis (TensorCore shard)
        s_id = pl.program_id(1)   # "arbitrary" reduction axis

        @pl.when(s_id == 0)
        def _init():
            acc_ref[...] = jnp.zeros_like(acc_ref)

        x = x_ref[...].astype(jnp.float32)
        t = t_ref[...].astype(jnp.float32)
        p = jax.nn.sigmoid(x)                                   # EUP exp + recip

        if needs_mask:
            # The last (or a clamped phantom) block can cover rows past the end
            # of the array -> junk data.  Mask by global row index (cheap VPU
            # work, fully hidden under the input DMA).
            blk = c_id * steps_per_core + s_id
            row = blk * block_rows + jax.lax.broadcasted_iota(
                jnp.int32, (block_rows, _LANES), 0)
            keep = row < rows
            p = jnp.where(keep, p, 0.0)
            t = jnp.where(keep, t, 0.0)

        # Lane-wise partial sums only (VPU adds across row blocks); the 128-lane
        # reduction happens once, in the wrapper.
        pt = jnp.sum(p * t, axis=0, keepdims=True)              # (1, 128)
        sp = jnp.sum(p, axis=0, keepdims=True)
        st = jnp.sum(t, axis=0, keepdims=True)
        partial = jnp.concatenate([pt, sp, st], axis=0)         # (3, 128)
        acc_ref[...] = acc_ref[...] + partial[None]             # (1, 3, 128)

    return kernel


def tversky_loss(inputs, targets, smooth=1.0, alpha=0.5, beta=0.5,
                 max_block_rows=4096):
    """JAX/Pallas equivalent of TverskyLoss.forward.  Returns an f32 scalar."""
    x = inputs.reshape(-1)        # free (bitcast) reshape; keep native dtype
    t = targets.reshape(-1)
    total = x.shape[0]

    rows = -(-total // _LANES)
    pad = rows * _LANES - total
    if pad:
        # Rare ragged-lane tail (< 128 elements).  Neutral values contribute 0
        # to all three sums (sigmoid(-1e4) == 0, target == 0).
        # TODO(synk): a fully zero-copy path for numel % 128 != 0 would need a
        # manual-DMA (pl.ANY) tail; the pad here is the only remaining copy.
        if jnp.issubdtype(x.dtype, jnp.floating):
            x_pad = jnp.full((pad,), _NEUTRAL_LOGIT, x.dtype)
        else:
            x = x.astype(jnp.float32)
            x_pad = jnp.full((pad,), _NEUTRAL_LOGIT, jnp.float32)
        x = jnp.concatenate([x, x_pad])
        t = jnp.concatenate([t, jnp.zeros((pad,), t.dtype)])

    x2 = x.reshape(rows, _LANES)
    t2 = t.reshape(rows, _LANES)

    # Tile sizing: largest block that keeps the double-buffered working set well
    # under every generation's scoped-VMEM default (f32 @ 4096 rows -> 8 MiB).
    # 4096 is a multiple of 32, satisfying the sublane tiling constraint for
    # f32 / bf16 / int8 inputs alike; small inputs use the full row extent.
    if rows <= max_block_rows:
        block_rows = rows            # block == full dim -> always layout-legal
    else:
        block_rows = max_block_rows
    n_blocks = -(-rows // block_rows)

    # Shard the row range across two TensorCores (v7x); on single-core v5e/v6e
    # the "parallel" axis just runs sequentially and is harmless.
    num_cores = 2 if n_blocks >= 2 else 1
    steps_per_core = -(-n_blocks // num_cores)
    has_phantom = num_cores * steps_per_core != n_blocks
    needs_mask = (rows % block_rows != 0) or has_phantom

    def in_index_map(c, s):
        blk = c * steps_per_core + s
        if has_phantom:
            # Clamp phantom steps to the last real block; their contribution is
            # masked to zero inside the kernel.
            blk = jnp.minimum(blk, n_blocks - 1)
        return (blk, 0)

    kernel = _make_kernel(block_rows, rows, steps_per_core, needs_mask)

    bytes_accessed = (x2.size * x2.dtype.itemsize
                      + t2.size * t2.dtype.itemsize
                      + num_cores * 3 * _LANES * 4)

    acc = pl.pallas_call(
        kernel,
        out_shape=jax.ShapeDtypeStruct((num_cores, 3, _LANES), jnp.float32),
        grid=(num_cores, steps_per_core),
        in_specs=[
            pl.BlockSpec((block_rows, _LANES), in_index_map),
            pl.BlockSpec((block_rows, _LANES), in_index_map),
        ],
        out_specs=pl.BlockSpec((1, 3, _LANES), lambda c, s: (c, 0, 0)),
        compiler_params=pltpu.CompilerParams(
            dimension_semantics=("parallel", "arbitrary"),
        ),
        cost_estimate=pl.CostEstimate(
            flops=6 * rows * _LANES,
            transcendentals=rows * _LANES,
            bytes_accessed=bytes_accessed,
        ),
    )(x2, t2)

    # Tiny final reduction + scalar Tversky ratio in plain JAX.
    sums = jnp.sum(acc, axis=(0, 2))          # [sum(p*t), sum(p), sum(t)]
    tp = sums[0]
    fp = sums[1] - tp                          # sum((1-t)*p) == sum(p) - TP
    fn = sums[2] - tp                          # sum(t*(1-p)) == sum(t) - TP
    smooth = jnp.float32(smooth)
    tversky = (tp + smooth) / (tp + jnp.float32(alpha) * fp
                               + jnp.float32(beta) * fn + smooth)
    return (1.0 - tversky).astype(jnp.float32)


def _tversky_loss_ref(inputs, targets, smooth=1.0, alpha=0.5, beta=0.5):
    """Pure-JAX reference (mirrors the PyTorch module)."""
    p = jax.nn.sigmoid(inputs.astype(jnp.float32).reshape(-1))
    t = targets.astype(jnp.float32).reshape(-1)
    tp = jnp.sum(p * t)
    fp = jnp.sum((1.0 - t) * p)
    fn = jnp.sum(t * (1.0 - p))
    return 1.0 - (tp + smooth) / (tp + alpha * fp + beta * fn + smooth)


if __name__ == "__main__":
    key = jax.random.PRNGKey(0)
    B, C, H, W = 2, 4, 16, 16
    k1, k2 = jax.random.split(key)

    # Logits (pre-sigmoid predictions) and a binary target mask.
    inputs = 2.0 * jax.random.normal(k1, (B, C, H, W), dtype=jnp.float32)
    targets = (jax.random.uniform(k2, (B, C, H, W)) > 0.7).astype(jnp.float32)

    loss = tversky_loss(inputs, targets)
    jax.block_until_ready(loss)

    ref = _tversky_loss_ref(inputs, targets)
    np.testing.assert_allclose(np.asarray(loss), np.asarray(ref),
                               rtol=2e-5, atol=1e-5)
    print("KERNEL_OK")
</pallas_src>

<mosaic_0001>
module attributes {stable_mosaic.version = 11 : i64} {
  func.func @kernel(%arg0: i32, %arg1: i32, %arg2: memref<16x128xf32, #tpu.memory_space<vmem>>, %arg3: memref<16x128xf32, #tpu.memory_space<vmem>>, %arg4: memref<1x3x128xf32, #tpu.memory_space<vmem>>) attributes {dimension_semantics = [#tpu.dimension_semantics<parallel>, #tpu.dimension_semantics<arbitrary>], iteration_bounds = array<i64: 1, 1>, scalar_prefetch = 0 : i64, scratch_operands = 0 : i64, tpu.core_type = #tpu.core_type<tc>, window_params = [{transform_indices = @transform_0, window_bounds = array<i64: 16, 128>}, {transform_indices = @transform_1, window_bounds = array<i64: 16, 128>}, {transform_indices = @transform_2, window_bounds = array<i64: 1, 3, 128>}]} {
    %c0_i32 = arith.constant 0 : i32
    %0 = arith.cmpi eq, %arg1, %c0_i32 : i32
    %1 = arith.extui %0 : i1 to i32
    %c0_i32_0 = arith.constant 0 : i32
    %2 = arith.cmpi ne, %1, %c0_i32_0 : i32
    scf.if %2 {
      %cst_13 = arith.constant 0.000000e+00 : f32
      %22 = vector.broadcast %cst_13 : f32 to vector<1x3x128xf32>
      %c0_14 = arith.constant 0 : index
      %c0_15 = arith.constant 0 : index
      %c0_16 = arith.constant 0 : index
      %23 = vector.load %arg4[%c0_14, %c0_15, %c0_16] : memref<1x3x128xf32, #tpu.memory_space<vmem>>, vector<1x3x128xf32>
      tpu.vector_store %arg4[%c0_14, %c0_15, %c0_16], %22 {strides = array<i32>} : memref<1x3x128xf32, #tpu.memory_space<vmem>>, vector<1x3x128xf32>,
    } else {
    }
    %c0 = arith.constant 0 : index
    %c0_1 = arith.constant 0 : index
    %3 = vector.load %arg2[%c0, %c0_1] : memref<16x128xf32, #tpu.memory_space<vmem>>, vector<16x128xf32>
    %c0_2 = arith.constant 0 : index
    %c0_3 = arith.constant 0 : index
    %4 = vector.load %arg3[%c0_2, %c0_3] : memref<16x128xf32, #tpu.memory_space<vmem>>, vector<16x128xf32>
    %5 = arith.negf %3 : vector<16x128xf32>
    %6 = math.exp %5 : vector<16x128xf32>
    %cst = arith.constant 1.000000e+00 : f32
    %7 = vector.broadcast %cst : f32 to vector<16x128xf32>
    %8 = arith.addf %7, %6 : vector<16x128xf32>
    %9 = arith.divf %7, %8 : vector<16x128xf32>
    %10 = arith.mulf %9, %4 : vector<16x128xf32>
    %cst_4 = arith.constant dense<0.000000e+00> : vector<128xf32>
    %11 = vector.multi_reduction <add>, %10, %cst_4 [0] : vector<16x128xf32> to vector<128xf32>
    %12 = vector.shape_cast %11 : vector<128xf32> to vector<1x128xf32>
    %cst_5 = arith.constant dense<0.000000e+00> : vector<128xf32>
    %13 = vector.multi_reduction <add>, %9, %cst_5 [0] : vector<16x128xf32> to vector<128xf32>
    %14 = vector.shape_cast %13 : vector<128xf32> to vector<1x128xf32>
    %cst_6 = arith.constant dense<0.000000e+00> : vector<128xf32>
    %15 = vector.multi_reduction <add>, %4, %cst_6 [0] : vector<16x128xf32> to vector<128xf32>
    %16 = vector.shape_cast %15 : vector<128xf32> to vector<1x128xf32>
    %17 = tpu.concatenate %12, %14, %16 in 0 : vector<1x128xf32>, vector<1x128xf32>, vector<1x128xf32> -> vector<3x128xf32>
    %c0_7 = arith.constant 0 : index
    %c0_8 = arith.constant 0 : index
    %c0_9 = arith.constant 0 : index
    %18 = vector.load %arg4[%c0_7, %c0_8, %c0_9] : memref<1x3x128xf32, #tpu.memory_space<vmem>>, vector<1x3x128xf32>
    %19 = vector.shape_cast %17 : vector<3x128xf32> to vector<1x3x128xf32>
    %20 = arith.addf %18, %19 : vector<1x3x128xf32>
    %c0_10 = arith.constant 0 : index
    %c0_11 = arith.constant 0 : index
    %c0_12 = arith.constant 0 : index
    %21 = vector.load %arg4[%c0_10, %c0_11, %c0_12] : memref<1x3x128xf32, #tpu.memory_space<vmem>>, vector<1x3x128xf32>
    tpu.vector_store %arg4[%c0_10, %c0_11, %c0_12], %20 {strides = array<i32>} : memref<1x3x128xf32, #tpu.memory_space<vmem>>, vector<1x3x128xf32>,
    return
  }
  func.func @transform_0(%arg0: i32, %arg1: i32) -> (i32, i32) {
    %c1_i32 = arith.constant 1 : i32
    %0 = arith.muli %arg0, %c1_i32 : i32
    %1 = arith.addi %0, %arg1 : i32
    %c0_i32 = arith.constant 0 : i32
    %c0_i32_0 = arith.constant 0 : i32
    return %1, %c0_i32 : i32, i32
  }
  func.func @transform_1(%arg0: i32, %arg1: i32) -> (i32, i32) {
    %c1_i32 = arith.constant 1 : i32
    %0 = arith.muli %arg0, %c1_i32 : i32
    %1 = arith.addi %0, %arg1 : i32
    %c0_i32 = arith.constant 0 : i32
    %c0_i32_0 = arith.constant 0 : i32
    return %1, %c0_i32 : i32, i32
  }
  func.func @transform_2(%arg0: i32, %arg1: i32) -> (i32, i32, i32) {
    %c0_i32 = arith.constant 0 : i32
    %c0_i32_0 = arith.constant 0 : i32
    %c0_i32_1 = arith.constant 0 : i32
    return %arg0, %c0_i32, %c0_i32_0 : i32, i32, i32
  }
}

</mosaic_0001>

<bundles_post_ra>
// kernel: tpu_custom_call.1
= control target key start
LH: loop header
LB: loop body
LE: loop exit
PB: predicated region body
PF: predicated region fallthrough
CT: control target
= control target key end

     0   :  { %7 = vsyncpa [#allocation3], 0  ;;  %s224_s0 = inlined_call_operand.hbm [shape: f32[16,128], index: 0, kind: input, shape index: {}]   ;;  %s225_s1 = inlined_call_operand.hbm [shape: f32[16,128], index: 1, kind: input, shape index: {}]   ;;  %s226_s2 = inlined_call_operand.vmem [shape: f32[1,3,128], index: 2, kind: output, shape index: {}]  }
   0x1   :  { %8 = vsyncpa [#allocation5], 0  ;;  %s171_s9 = smov [#allocation2]   ;;  %s123_s13 = scalar_lea.hbm %s224_s0, 256 }
   0x2   :  { %s18_s10 = sshll.u32 %s171_s9, 4  ;;  %p124_p0 = scmp.ne.s32.totalorder %s224_s0, %s123_s13  ;;  %s19_s10 = int_to_ptr.vmem [resolvable:$true] %s18_s10 }
   0x3   :  { %p127_p1 = scmp.lt.u32.totalorder %s123_s13, %s224_s0 }
   0x5   :  { %p129_p2 = pnand %p127_p1, %p124_p0 }
   0x7   :  { %132 = shalt.err (!%p129_p2)
}
   0x8   :  { %s133_s18 = scalar_lea.vmem %s19_s10, 256  ;;  %p138_p4 = scmp.lt.s32.totalorder %s19_s10, %s19_s10 }
   0x9   :  { %p134_p3 = scmp.ne.s32.totalorder %s19_s10, %s133_s18  ;;  %p139_p5 = scmp.lt.s32.totalorder %s133_s18, %s133_s18 }
   0xb   :  { %p140_p6 = por %p139_p5, %p138_p4 }
   0xd   :  { %p141_p7 = pnand %p140_p6, %p134_p3 }
   0xf   :  { %144 = shalt.err (!%p141_p7)
}
  0x10   :  { %s172_s19 = smov 128   ;;  %s173_s20 = smov 8  }
  0x11   :  { %24 = dma.hbm_to_vmem [thread:$0]  %s224_s0, 256, %s19_s10, [#allocation3], %s172_s19, %s172_s19, %s173_s20  }
  0x12   :  { %s174_s23 = smov [#allocation4]   ;;  %s145_s27 = scalar_lea.hbm %s225_s1, 256 }
  0x13   :  { %s34_s24 = sshll.u32 %s174_s23, 4  ;;  %p146_p8 = scmp.ne.s32.totalorder %s225_s1, %s145_s27  ;;  %s35_s24 = int_to_ptr.vmem [resolvable:$true] %s34_s24 }
  0x14   :  { %p149_p9 = scmp.lt.u32.totalorder %s145_s27, %s225_s1 }
  0x16   :  { %p151_p10 = pnand %p149_p9, %p146_p8 }
  0x18   :  { %154 = shalt.err (!%p151_p10)
}
  0x19   :  { %s155_s4 = scalar_lea.vmem %s35_s24, 256  ;;  %p160_p12 = scmp.lt.s32.totalorder %s35_s24, %s35_s24 }
  0x1a   :  { %p156_p11 = scmp.ne.s32.totalorder %s35_s24, %s155_s4  ;;  %p161_p13 = scmp.lt.s32.totalorder %s155_s4, %s155_s4 }
  0x1c   :  { %p162_p0 = por %p161_p13, %p160_p12 }
  0x1e   :  { %p163_p1 = pnand %p162_p0, %p156_p11 }
  0x20   :  { %166 = shalt.err (!%p163_p1)
}
  0x21   :  { %40 = dma.hbm_to_vmem [thread:$0]  %s225_s1, 256, %s35_s24, [#allocation5], %s172_s19, %s172_s19, %s173_s20  }
  0x22   :  { %167 = dma.done.wait [#allocation3], 256  }
  0x23   :  { %168 = vsyncadd [#allocation3], 4294967040 }
  0x24   :  { %169 = dma.done.wait [#allocation5], 256  }
  0x25   :  { %170 = vsyncadd [#allocation5], 4294967040  ;;  %v175_v0 = vmov 0.0   ;;  %v56_v1 = vld [vmem:[#allocation2] sm:$0xff]  ;;  %v57_v2 = vld [vmem:[#allocation2 + $0x8] sm:$0xff]  ;;  %vm95_vm0 = vcmask 1040384  }
  0x26   :  { %55 = vst [vmem:[%s226_s2] sm:$0x7] %v175_v0  ;;  %v108_v3 = vmul.f32 -1.442695, %v56_v1  ;;  %v109_v4 = vmul.f32 -1.442695, %v57_v2  ;;  %v58_v9 = vld [vmem:[#allocation4] sm:$0xff] }
  0x27   :  { %v59_v10 = vld [vmem:[#allocation4 + $0x8] sm:$0xff]  ;;  %vm97_vm1 = vcmask 1041408  }
  0x28   :  { %115 = vpow2.f32 %v108_v3  ;;  %v88_v11 = vadd.f32 %v59_v10, %v58_v9 }
  0x29   :  { %117 = vpow2.f32 %v109_v4 }
  0x2a   :  { %v89_v12 = vrot.slane %v88_v11, 4 }
  0x2c   :  { %v90_v13 = vadd.f32 %v89_v12, %v88_v11 }
  0x2d   :  { %v99_v36 = vld [vmem:[%s226_s2] sm:$0x7] }
  0x2e   :  { %v91_v19 = vrot.slane %v90_v13, 2 }
  0x30   :  { %v92_v24 = vadd.f32 %v91_v19, %v90_v13 }
  0x32   :  { %v116_v5 = vpop.eup %115  ;;  %v93_v29 = vrot.slane %v92_v24, 1 }
  0x33   :  { %v118_v6 = vpop.eup %117  ;;  %v66_v7 = vadd.f32 1.0, %v116_v5 }
  0x34   :  { %v67_v8 = vadd.f32 1.0, %v118_v6  ;;  %v94_v34 = vadd.f32 %v93_v29, %v92_v24 }
  0x35   :  { %119 = vrcp.f32 %v66_v7 }
  0x36   :  { %121 = vrcp.f32 %v67_v8 }
  0x3f   :  { %v120_v14 = vpop.eup %119 }
  0x40   :  { %v122_v15 = vpop.eup %121  ;;  %v72_v16 = vmul.f32 %v120_v14, %v58_v9 }
  0x41   :  { %v73_v17 = vmul.f32 %v122_v15, %v59_v10  ;;  %v81_v18 = vadd.f32 %v122_v15, %v120_v14 }
  0x43   :  { %v74_v20 = vadd.f32 %v73_v17, %v72_v16  ;;  %v82_v21 = vrot.slane %v81_v18, 4 }
  0x45   :  { %v75_v22 = vrot.slane %v74_v20, 4  ;;  %v83_v23 = vadd.f32 %v82_v21, %v81_v18 }
  0x47   :  { %v76_v25 = vadd.f32 %v75_v22, %v74_v20  ;;  %v84_v26 = vrot.slane %v83_v23, 2 }
  0x49   :  { %v77_v27 = vrot.slane %v76_v25, 2  ;;  %v85_v28 = vadd.f32 %v84_v26, %v83_v23 }
  0x4b   :  { %v78_v30 = vadd.f32 %v77_v27, %v76_v25  ;;  %v86_v31 = vrot.slane %v85_v28, 1 }
  0x4d   :  { %v79_v32 = vrot.slane %v78_v30, 1  ;;  %v87_v33 = vadd.f32 %v86_v31, %v85_v28 }
  0x4f   :  { %v80_v35 = vadd.f32 %v79_v32, %v78_v30 }
  0x51   :  { %v96_v37 = vsel %vm95_vm0, %v80_v35, %v87_v33 }
  0x52   :  { %v98_v38 = vsel %vm97_vm1, %v96_v37, %v94_v34 }
  0x53   :  { %v100_v39 = vadd.f32 %v99_v36, %v98_v38 }
  0x55   :  { %101 = vst [vmem:[%s226_s2] sm:$0x7] %v100_v39 }
  0x56   :  { %106 = vsyncpa [#allocation3], 1 }
  0x57   :  { %107 = vsyncpa [#allocation5], 1 }

</bundles_post_ra>
